<compile_context>
chip_gen: v7x
topology: tpu7x:2x2x1
jax: 0.10.0
libtpu: 0.0.40
codegen_flags: <defaults>
</compile_context>

<pallas_src>
import jax
import jax.numpy as jnp
from jax import lax
from jax.experimental import pallas as pl
from jax.experimental.pallas import tpu as pltpu

H1 = 128        # layer-1 width (native)
H2 = 128        # layer-2 width, zero-padded from 64
OUT_ROWS = 8    # sublane-padded output rows (row 0 is the real logit)


def _discriminator_kernel(x_ref, w1_ref, b1_ref, w2_ref, b2_ref, w3t_ref,
                          b3_ref, o_ref):
    # Layer 1: (tile_b, in_dim) @ (in_dim, 128) -> (tile_b, 128), f32 accumulate
    h = jnp.dot(x_ref[...].astype(jnp.bfloat16), w1_ref[...],
                preferred_element_type=jnp.float32) + b1_ref[...]
    h = jnp.maximum(h, 0.2 * h).astype(jnp.bfloat16)   # LeakyReLU(0.2), cast once
    # Layer 2 (outputs zero-padded 64 -> 128): (tile_b, 128) @ (128, 128)
    h = jnp.dot(h, w2_ref[...], preferred_element_type=jnp.float32) + b2_ref[...]
    h = jnp.maximum(h, 0.2 * h).astype(jnp.bfloat16)
    # Layer 3 in transposed / lane-major form:
    #   (OUT_ROWS, 128) x (tile_b, 128) contracting dim 1 of both -> (OUT_ROWS, tile_b)
    logits = lax.dot_general(w3t_ref[...], h, (((1,), (1,)), ((), ())),
                             preferred_element_type=jnp.float32) + b3_ref[...]
    o_ref[...] = jax.nn.sigmoid(logits).astype(o_ref.dtype)


def _round_up(x, m):
    return ((x + m - 1) // m) * m


def discriminator_forward(x, params, *, tile_b=512):
    """x: (B, input_dim) f32 -> (B, 1) f32."""
    w1, b1, w2, b2, w3, b3 = params
    B, in_dim = x.shape

    # --- pad layer 2 to full lane width and build the transposed layer-3 row --
    w2p = jnp.zeros((H1, H2), w2.dtype).at[:, :w2.shape[1]].set(w2)
    b2p = jnp.zeros((1, H2), b2.dtype).at[:, :b2.shape[1]].set(b2)
    w3t = jnp.zeros((OUT_ROWS, H2), w3.dtype).at[0, :w3.shape[0]].set(w3[:, 0])
    # b3 stays (1, 1) and broadcasts over the (OUT_ROWS, tile_b) logit slab.

    # --- batch tiling: lane-dense 128-multiple tiles, >= 2 grid steps if B>128
    tile_b = max(128, min(tile_b, _round_up(B, 128)))
    if B > 128:
        tile_b = min(tile_b, _round_up(pl.cdiv(B, 2), 128))
    b_pad = _round_up(B, tile_b)
    if b_pad != B:
        x = jnp.pad(x, ((0, b_pad - B), (0, 0)))
    grid = (b_pad // tile_b,)

    # weights / biases: whole-array blocks, constant index_map -> VMEM-resident
    def resident(a):
        return pl.BlockSpec(a.shape, lambda i: (0, 0))

    # advisory cost estimate reflecting the padded work actually executed
    flops = 2 * b_pad * (in_dim * H1 + H1 * H2 + H2 * OUT_ROWS)
    bytes_accessed = int(
        b_pad * in_dim * 4
        + sum(int(p.size) * p.dtype.itemsize for p in (w1, b1, w2p, b2p, w3t, b3))
        + OUT_ROWS * b_pad * 4)
    cost = pl.CostEstimate(flops=flops, transcendentals=OUT_ROWS * b_pad,
                           bytes_accessed=bytes_accessed)

    out = pl.pallas_call(
        _discriminator_kernel,
        out_shape=jax.ShapeDtypeStruct((OUT_ROWS, b_pad), jnp.float32),
        grid=grid,
        in_specs=[pl.BlockSpec((tile_b, in_dim), lambda i: (i, 0)),
                  resident(w1), resident(b1),
                  resident(w2p), resident(b2p),
                  resident(w3t), resident(b3)],
        out_specs=pl.BlockSpec((OUT_ROWS, tile_b), lambda i: (0, i)),
        compiler_params=pltpu.CompilerParams(
            dimension_semantics=("parallel",)),
        cost_estimate=cost,
    )(x, w1, b1, w2p, b2p, w3t, b3)

    # row 0 holds the real (pre-slice) outputs; padded rows/columns are dropped.
    return out[0, :B].reshape(B, 1)


def init_params(key, input_dim):
    """PyTorch nn.Linear-style init: U(-1/sqrt(fan_in), 1/sqrt(fan_in)).
    Weights stored bf16 (MXU input dtype), biases f32."""
    dims = [(input_dim, 128), (128, 64), (64, 1)]
    params = []
    for i, (fan_in, fan_out) in enumerate(dims):
        kw, kb = jax.random.split(jax.random.fold_in(key, i))
        bound = 1.0 / float(fan_in) ** 0.5
        w = jax.random.uniform(kw, (fan_in, fan_out), jnp.float32,
                               minval=-bound, maxval=bound).astype(jnp.bfloat16)
        b = jax.random.uniform(kb, (1, fan_out), jnp.float32,
                               minval=-bound, maxval=bound)
        params += [w, b]
    return tuple(params)


def reference_forward(x, params):
    """Pure-JAX reference mirroring the kernel's bf16-in / f32-accumulate math."""
    w1, b1, w2, b2, w3, b3 = params

    def lin(h, w, b):
        return jnp.dot(h.astype(jnp.bfloat16), w,
                       preferred_element_type=jnp.float32) + b

    h = lin(x, w1, b1)
    h = jnp.maximum(h, 0.2 * h).astype(jnp.bfloat16)
    h = lin(h, w2, b2)
    h = jnp.maximum(h, 0.2 * h).astype(jnp.bfloat16)
    return jax.nn.sigmoid(lin(h, w3, b3))


if __name__ == "__main__":
    input_dim = 32
    batch = 256          # tiled as 2 grid steps of tile_b=128 (>= 2 TC shards)

    key = jax.random.PRNGKey(0)
    kx, kp = jax.random.split(key)
    x = jax.random.normal(kx, (batch, input_dim), jnp.float32)
    params = init_params(kp, input_dim)

    out = jax.block_until_ready(discriminator_forward(x, params))
    ref = reference_forward(x, params)

    assert out.shape == (batch, 1)
    assert jnp.allclose(out, ref, atol=1e-4, rtol=1e-4), "mismatch vs reference"

    print("KERNEL_OK")
</pallas_src>

<mosaic_0001>
module attributes {stable_mosaic.version = 11 : i64} {
  func.func @_discriminator_kernel(%arg0: i32, %arg1: memref<128x32xf32, #tpu.memory_space<vmem>>, %arg2: memref<32x128xbf16, #tpu.memory_space<vmem>>, %arg3: memref<1x128xf32, #tpu.memory_space<vmem>>, %arg4: memref<128x128xbf16, #tpu.memory_space<vmem>>, %arg5: memref<1x128xf32, #tpu.memory_space<vmem>>, %arg6: memref<8x128xbf16, #tpu.memory_space<vmem>>, %arg7: memref<1x1xf32, #tpu.memory_space<vmem>>, %arg8: memref<8x128xf32, #tpu.memory_space<vmem>>) attributes {dimension_semantics = [#tpu.dimension_semantics<parallel>], iteration_bounds = array<i64: 2>, scalar_prefetch = 0 : i64, scratch_operands = 0 : i64, tpu.core_type = #tpu.core_type<tc>, window_params = [{transform_indices = @transform_0, window_bounds = array<i64: 128, 32>}, {pipeline_mode = #tpu.pipeline_mode<synchronous>, transform_indices = @transform_1, window_bounds = array<i64: 32, 128>}, {pipeline_mode = #tpu.pipeline_mode<synchronous>, transform_indices = @transform_2, window_bounds = array<i64: 1, 128>}, {pipeline_mode = #tpu.pipeline_mode<synchronous>, transform_indices = @transform_3, window_bounds = array<i64: 128, 128>}, {pipeline_mode = #tpu.pipeline_mode<synchronous>, transform_indices = @transform_4, window_bounds = array<i64: 1, 128>}, {pipeline_mode = #tpu.pipeline_mode<synchronous>, transform_indices = @transform_5, window_bounds = array<i64: 8, 128>}, {pipeline_mode = #tpu.pipeline_mode<synchronous>, transform_indices = @transform_6, window_bounds = array<i64: 1, 1>}, {transform_indices = @transform_7, window_bounds = array<i64: 8, 128>}]} {
    %c0 = arith.constant 0 : index
    %c0_0 = arith.constant 0 : index
    %0 = vector.load %arg1[%c0, %c0_0] : memref<128x32xf32, #tpu.memory_space<vmem>>, vector<128x32xf32>
    %1 = arith.truncf %0 : vector<128x32xf32> to vector<128x32xbf16>
    %c0_1 = arith.constant 0 : index
    %c0_2 = arith.constant 0 : index
    %2 = vector.load %arg2[%c0_1, %c0_2] : memref<32x128xbf16, #tpu.memory_space<vmem>>, vector<32x128xbf16>
    %cst = arith.constant dense<0.000000e+00> : vector<128x128xf32>
    %3 = tpu.matmul %1, %2, %cst {dimension_numbers = #tpu.dot_dimension_numbers<[1], [0], [0], [1], [0, 0, 1, 1], [], []>} : vector<128x32xbf16>, vector<32x128xbf16>, vector<128x128xf32> -> vector<128x128xf32>
    %c0_3 = arith.constant 0 : index
    %c0_4 = arith.constant 0 : index
    %4 = vector.load %arg3[%c0_3, %c0_4] : memref<1x128xf32, #tpu.memory_space<vmem>>, vector<1x128xf32>
    %5 = vector.broadcast %4 : vector<1x128xf32> to vector<128x128xf32>
    %6 = arith.addf %3, %5 : vector<128x128xf32>
    %cst_5 = arith.constant 2.000000e-01 : f32
    %7 = vector.broadcast %cst_5 : f32 to vector<128x128xf32>
    %8 = arith.mulf %7, %6 : vector<128x128xf32>
    %9 = arith.maximumf %6, %8 : vector<128x128xf32>
    %10 = arith.truncf %9 : vector<128x128xf32> to vector<128x128xbf16>
    %c0_6 = arith.constant 0 : index
    %c0_7 = arith.constant 0 : index
    %11 = vector.load %arg4[%c0_6, %c0_7] : memref<128x128xbf16, #tpu.memory_space<vmem>>, vector<128x128xbf16>
    %cst_8 = arith.constant dense<0.000000e+00> : vector<128x128xf32>
    %12 = tpu.matmul %10, %11, %cst_8 {dimension_numbers = #tpu.dot_dimension_numbers<[1], [0], [0], [1], [0, 0, 1, 1], [], []>} : vector<128x128xbf16>, vector<128x128xbf16>, vector<128x128xf32> -> vector<128x128xf32>
    %c0_9 = arith.constant 0 : index
    %c0_10 = arith.constant 0 : index
    %13 = vector.load %arg5[%c0_9, %c0_10] : memref<1x128xf32, #tpu.memory_space<vmem>>, vector<1x128xf32>
    %14 = vector.broadcast %13 : vector<1x128xf32> to vector<128x128xf32>
    %15 = arith.addf %12, %14 : vector<128x128xf32>
    %cst_11 = arith.constant 2.000000e-01 : f32
    %16 = vector.broadcast %cst_11 : f32 to vector<128x128xf32>
    %17 = arith.mulf %16, %15 : vector<128x128xf32>
    %18 = arith.maximumf %15, %17 : vector<128x128xf32>
    %19 = arith.truncf %18 : vector<128x128xf32> to vector<128x128xbf16>
    %c0_12 = arith.constant 0 : index
    %c0_13 = arith.constant 0 : index
    %20 = vector.load %arg6[%c0_12, %c0_13] : memref<8x128xbf16, #tpu.memory_space<vmem>>, vector<8x128xbf16>
    %cst_14 = arith.constant dense<0.000000e+00> : vector<8x128xf32>
    %21 = tpu.matmul %20, %19, %cst_14 {dimension_numbers = #tpu.dot_dimension_numbers<[1], [1], [0], [0], [0, 0, 1, 0], [], []>} : vector<8x128xbf16>, vector<128x128xbf16>, vector<8x128xf32> -> vector<8x128xf32>
    %c0_15 = arith.constant 0 : index
    %c0_16 = arith.constant 0 : index
    %22 = vector.load %arg7[%c0_15, %c0_16] : memref<1x1xf32, #tpu.memory_space<vmem>>, vector<1x1xf32>
    %23 = vector.broadcast %22 : vector<1x1xf32> to vector<8x128xf32>
    %24 = arith.addf %21, %23 : vector<8x128xf32>
    %25 = arith.negf %24 : vector<8x128xf32>
    %26 = math.exp %25 : vector<8x128xf32>
    %cst_17 = arith.constant 1.000000e+00 : f32
    %27 = vector.broadcast %cst_17 : f32 to vector<8x128xf32>
    %28 = arith.addf %27, %26 : vector<8x128xf32>
    %29 = arith.divf %27, %28 : vector<8x128xf32>
    %c0_18 = arith.constant 0 : index
    %c0_19 = arith.constant 0 : index
    %30 = vector.load %arg8[%c0_18, %c0_19] : memref<8x128xf32, #tpu.memory_space<vmem>>, vector<8x128xf32>
    tpu.vector_store %arg8[%c0_18, %c0_19], %29 {strides = array<i32>} : memref<8x128xf32, #tpu.memory_space<vmem>>, vector<8x128xf32>,
    return
  }
  func.func @transform_0(%arg0: i32) -> (i32, i32) {
    %c0_i32 = arith.constant 0 : i32
    %c0_i32_0 = arith.constant 0 : i32
    return %arg0, %c0_i32 : i32, i32
  }
  func.func @transform_1(%arg0: i32) -> (i32, i32) {
    %c0_i32 = arith.constant 0 : i32
    %c0_i32_0 = arith.constant 0 : i32
    %c0_i32_1 = arith.constant 0 : i32
    return %c0_i32, %c0_i32_0 : i32, i32
  }
  func.func @transform_2(%arg0: i32) -> (i32, i32) {
    %c0_i32 = arith.constant 0 : i32
    %c0_i32_0 = arith.constant 0 : i32
    %c0_i32_1 = arith.constant 0 : i32
    return %c0_i32, %c0_i32_0 : i32, i32
  }
  func.func @transform_3(%arg0: i32) -> (i32, i32) {
    %c0_i32 = arith.constant 0 : i32
    %c0_i32_0 = arith.constant 0 : i32
    %c0_i32_1 = arith.constant 0 : i32
    return %c0_i32, %c0_i32_0 : i32, i32
  }
  func.func @transform_4(%arg0: i32) -> (i32, i32) {
    %c0_i32 = arith.constant 0 : i32
    %c0_i32_0 = arith.constant 0 : i32
    %c0_i32_1 = arith.constant 0 : i32
    return %c0_i32, %c0_i32_0 : i32, i32
  }
  func.func @transform_5(%arg0: i32) -> (i32, i32) {
    %c0_i32 = arith.constant 0 : i32
    %c0_i32_0 = arith.constant 0 : i32
    %c0_i32_1 = arith.constant 0 : i32
    return %c0_i32, %c0_i32_0 : i32, i32
  }
  func.func @transform_6(%arg0: i32) -> (i32, i32) {
    %c0_i32 = arith.constant 0 : i32
    %c0_i32_0 = arith.constant 0 : i32
    %c0_i32_1 = arith.constant 0 : i32
    return %c0_i32, %c0_i32_0 : i32, i32
  }
  func.func @transform_7(%arg0: i32) -> (i32, i32) {
    %c0_i32 = arith.constant 0 : i32
    %c0_i32_0 = arith.constant 0 : i32
    return %c0_i32, %arg0 : i32, i32
  }
}

</mosaic_0001>

<bundles_post_ra>
// kernel: tpu_custom_call.1
= control target key start
LH: loop header
LB: loop body
LE: loop exit
PB: predicated region body
PF: predicated region fallthrough
CT: control target
= control target key end

     0   :  { %s1347_s0 = inlined_call_operand.vmem [shape: f32[256,32], index: 0, kind: input, shape index: {}]   ;;  %s1348_s1 = inlined_call_operand.vmem [shape: bf16[32,128], index: 1, kind: input, shape index: {}]   ;;  %s1349_s2 = inlined_call_operand.vmem [shape: f32[1,128], index: 2, kind: input, shape index: {}]   ;;  %s1350_s3 = inlined_call_operand.vmem [shape: bf16[128,128], index: 3, kind: input, shape index: {}]   ;;  %s1351_s4 = inlined_call_operand.vmem [shape: f32[1,128], index: 4, kind: input, shape index: {}]   ;;  %s1352_s5 = inlined_call_operand.vmem [shape: bf16[8,128], index: 5, kind: input, shape index: {}]   ;;  %s1353_s6 = inlined_call_operand.<no memory space> [shape: f32[1,1], index: 6, kind: input, shape index: {}]   ;;  %s1354_s7 = inlined_call_operand.hbm [shape: f32[8,256], index: 7, kind: output, shape index: {}]  }
   0x1   :  { %v12_v0 = vstv %s1353_s6 }
   0x2   :  { %13 = vst [vmem:[#allocation2] sm:$0x1] %v12_v0 }
   0x3   :  { %14 = vsyncpa [#allocation4], 0 }
   0x4   :  { %16 = vsyncpa [#allocation4 + $0x1], 0  ;;  %s1138_s26 = smov 0   ;;  %s1140_s27 = smov 0  }
   0x5   :  { %s1142_s28 = smov 0   ;;  %s1144_s29 = smov 0  }
   0x6 LB: > { %s1159_s6 = sadd.s32 4294967295, %s1089_s29   ;;  %s830_s30 = sadd.s32 4294967294, %s1089_s29   ;;  %s1089_s29 = sphi %s1144_s29, %s1360_s29   ;;  %s1085_s28 = sphi %s1142_s28, %s1359_s28   ;;  %s1081_s27 = sphi %s1140_s27, %s1358_s27   ;;  %s1077_s26 = sphi %s1138_s26, %s1357_s26  }
   0x7   : > { %s1163_s8 = sadd.s32 1, %s1089_s29   ;;  %s181_s9 = sadd.s32 1, %s1085_s28 }
   0x8   : > { %s178_s10 = ssub.s32 %s1089_s29, %s1163_s8  ;;  %p191_p0 = scmp.ne.s32.totalorder %s1085_s28, %s1081_s27 }
   0x9   : > { %p179_p1 = scmp.eq.s32.totalorder %s178_s10, 0  ;;  %p192_p2 = scmp.eq.s32.totalorder %s1159_s6, 1 }
   0xa   : > { %p197_p3 = scmp.ne.s32.totalorder %s1081_s27, %s1077_s26  ;;  %p198_p4 = scmp.eq.s32.totalorder %s830_s30, 1 }
   0xb   : > { %s1174_s11 = scalar_select %p179_p1, %s1085_s28, %s181_s9  }
   0xc   : > { %p1176_p5 = por %p192_p2, %p191_p0  ;;  %p1180_p6 = por %p198_p4, %p197_p3 }
   0xd   : > { %p833_p7 = scmp.ge.s32.totalorder %s1089_s29, 1  ;;  %p243_p8 = scmp.lt.s32.totalorder %s1089_s29, 3 }
   0xf   : > { %p244_p9 = pnand %p833_p7, %p243_p8 }
  0x10   : > { %v1013_v1 = vld [vmem:[%s1348_s1] sm:$0xff] (!%p244_p9)   ;;  %s835_s16 = sshll.u32 (!%p244_p9), %s1159_s6, 4  ;;  %v1014_v2 = vld [vmem:[%s1348_s1 + $0x8] sm:$0xff] (!%p244_p9)   ;;  %vm329_vm0 = vcmask (!%p244_p9), 261120   ;;  %v1017_v17 = vld [vmem:[%s1350_s3 + $0x10] sm:$0xff] (!%p244_p9)   ;;  %vm1092_vm1 = vmmov (!%p244_p9), 0  }
  0x11   : > { %247 = sbr.rel (%p244_p9) target bundleno = 795 (0x31b), region = 48  ;;  %p276_p10 = scmp.lt.s32.totalorder (!%p244_p9), %s835_s16, 31  ;;  %898 = vmatprep.subr.bf16.mxu1 (!%p244_p9), %v1013_v1  ;;  %v1015_v3 = vld [vmem:[%s1350_s3] sm:$0xff] (!%p244_p9)   ;;  %v1016_v13 = vld [vmem:[%s1350_s3 + $0x8] sm:$0xff] (!%p244_p9)   ;;  %v1018_v21 = vld [vmem:[%s1350_s3 + $0x18] sm:$0xff] (!%p244_p9)  }
  0x12   : > { %899 = vmatpush3.bf16.msra.mxu1 (!%p244_p9), %v1013_v1  ;;  %v1019_v26 = vld [vmem:[%s1350_s3 + $0x20] sm:$0xff] (!%p244_p9)   ;;  %v1020_v32 = vld [vmem:[%s1350_s3 + $0x28] sm:$0xff] (!%p244_p9)   ;;  %v1021_v33 = vld [vmem:[%s1350_s3 + $0x30] sm:$0xff] (!%p244_p9)   ;;  %s272_s15 = sand.u32 (!%p244_p9), 1, %s1081_s27   ;;  %s860_s17 = sshll.u32 (!%p244_p9), %s1159_s6, 7 }
  0x13   : > { %900 = vmatprep.subr.bf16.mxu1 (!%p244_p9), %v1014_v2  ;;  %v1022_v34 = vld [vmem:[%s1350_s3 + $0x38] sm:$0xff] (!%p244_p9)   ;;  %v1249_v35 = vld [vmem:[%s1349_s2] ss:$0 sm:$0xff] (!%p244_p9)  ;;  %s1305_s22 = scalar_lea.hbm (!%p244_p9), %s1354_s7, %s860_s17  ;;  %s758_s23 = scalar_lea.sflag (!%p244_p9), [#allocation4], %s272_s15 }
  0x14   : > { %s1094_s6 = smov (!%p244_p9), [#allocation3]  }
  0x15   : > { %s1031_s25 = sshll.u32 (!%p244_p9), %s1094_s6, 4  ;;  %s1032_s25 = int_to_ptr.vmem [resolvable:$false] %s1031_s25 }
  0x16   : > { %901 = vmatpush3.bf16.msra.mxu1 (!%p244_p9), %v1014_v2  ;;  %s1033_s30 = scalar_lea.vmem (!%p244_p9), %s1032_s25, 256 }
  0x17   : > { %918 = vmatprep.subr.bf16.mxu1 (!%p244_p9), %v1015_v3 }
  0x18   : > { %s1362_s16 = smov (!%p276_p10, %s835_s16), 31 }
  0x19   : > { %s836_s21 = sshll.u32 %s1362_s16, 3  ;;  %s834_s16 = sshll.u32 %s272_s15, 3 }
  0x1a   : > { %s1199_s24 = scalar_lea.vmem %s1347_s0, %s836_s21  ;;  %s274_s18 = scalar_lea.vmem [#allocation3], %s834_s16 }
  0x1b   : > { %v282_v4 = vld [vmem:[%s1199_s24] sm:$0xff]  ;;  %v283_v5 = vld [vmem:[%s1199_s24 + $0x8] sm:$0xff]  ;;  %v284_v6 = vld [vmem:[%s1199_s24 + $0x10] sm:$0xff]  ;;  %s771_s19 = sshll.u32 %s274_s18, 4  ;;  %s1307_s19 = int_to_ptr.vmem [resolvable:$true] %s771_s19 }
  0x1c   : > { %v298_v7 = vpack.c.bf16 %v283_v5, %v282_v4  ;;  %v285_v8 = vld [vmem:[%s1199_s24 + $0x18] sm:$0xff]  ;;  %v286_v9 = vld [vmem:[%s1199_s24 + $0x20] sm:$0xff]  ;;  %v287_v10 = vld [vmem:[%s1199_s24 + $0x28] sm:$0xff]  ;;  %p1034_p0 = scmp.lt.s32.totalorder %s1307_s19, %s1032_s25 }
  0x1d   : > { %v299_v11 = vpack.c.bf16 %v285_v8, %v284_v6  ;;  %v300_v12 = vpack.c.bf16 %v287_v10, %v286_v9  ;;  %v288_v14 = vld [vmem:[%s1199_s24 + $0x30] sm:$0xff]  ;;  %v289_v15 = vld [vmem:[%s1199_s24 + $0x38] sm:$0xff]  ;;  %v290_v16 = vld [vmem:[%s1199_s24 + $0x40] sm:$0xff] }
  0x1e   : > { %902 = vmatprep.mubr.msk.bf16.mxu1 %vm329_vm0, %v298_v7  ;;  %v291_v18 = vld [vmem:[%s1199_s24 + $0x48] sm:$0xff]  ;;  %v301_v19 = vpack.c.bf16 %v289_v15, %v288_v14  ;;  %v292_v22 = vld [vmem:[%s1199_s24 + $0x50] sm:$0xff]  ;;  %v293_v23 = vld [vmem:[%s1199_s24 + $0x58] sm:$0xff] }
  0x1f   : > { %903 = vmatmul.mubr.msk.bf16.vlgmr.msra.gmra.mrb[0].mxu1 %vm329_vm0, %v299_v11  ;;  %v302_v20 = vpack.c.bf16 %v291_v18, %v290_v16  ;;  %v294_v24 = vld [vmem:[%s1199_s24 + $0x60] sm:$0xff]  ;;  %v295_v25 = vld [vmem:[%s1199_s24 + $0x68] sm:$0xff]  ;;  %v303_v27 = vpack.c.bf16 %v293_v23, %v292_v22  ;;  %v296_v29 = vld [vmem:[%s1199_s24 + $0x70] sm:$0xff] }
  0x20   : > { %906 = vmatprep.mubr.msk.bf16.mxu1 %vm329_vm0, %v300_v12  ;;  %919 = vmatpush3.bf16.msra.mxu1 %v1015_v3  ;;  %v304_v28 = vpack.c.bf16 %v295_v25, %v294_v24  ;;  %v297_v30 = vld [vmem:[%s1199_s24 + $0x78] sm:$0xff]  ;;  %s1027_s24 = scalar_lea.vmem %s1307_s19, 128 }
  0x21   : > { %920 = vmatprep.subr.bf16.mxu1 %v1016_v13  ;;  %v305_v31 = vpack.c.bf16 %v297_v30, %v296_v29  ;;  %p1028_p11 = scmp.ne.s32.totalorder %s1307_s19, %s1027_s24  ;;  %p1035_p1 = scmp.lt.s32.totalorder %s1033_s30, %s1027_s24 }
  0x23   : > { %p1029_p12 = pnand %p1028_p11, %p1176_p5  ;;  %p1036_p2 = por %p1035_p1, %p1034_p0 }
  0x24   : > { %921 = vmatpush3.bf16.msra.mxu1 %v1016_v13 }
  0x25   : > { %922 = vmatprep.subr.bf16.mxu1 %v1017_v17  ;;  %p1030_p13 = pneg %p1029_p12 }
  0x27   : > { %907 = vmatmul.mubr.msk.bf16.gmra.mrb[4].mxu1 %vm329_vm0, %v301_v19  ;;  %p1037_p3 = pnand %p1036_p2, %p1030_p13 }
  0x28   : > { %910 = vmatprep.mubr.msk.bf16.mxu1 %vm329_vm0, %v302_v20  ;;  %923 = vmatpush3.bf16.msra.mxu1 %v1017_v17 }
  0x29   : > { %924 = vmatprep.subr.bf16.mxu1 %v1018_v21 }
  0x2c   : > { %925 = vmatpush3.bf16.msra.mxu1 %v1018_v21 }
  0x2d   : > { %926 = vmatprep.subr.bf16.mxu1 %v1019_v26 }
  0x2f   : > { %911 = vmatmul.mubr.msk.bf16.gmra.mrb[8].mxu1 %vm329_vm0, %v303_v27 }
  0x30   : > { %914 = vmatprep.mubr.msk.bf16.mxu1 %vm329_vm0, %v304_v28  ;;  %927 = vmatpush3.bf16.msra.mxu1 %v1019_v26 }
  0x31   : > { %928 = vmatprep.subr.bf16.mxu1 %v1020_v32 }
  0x34   : > { %929 = vmatpush3.bf16.msra.mxu1 %v1020_v32 }
  0x35   : > { %930 = vmatprep.subr.bf16.mxu1 %v1021_v33 }
  0x37   : > { %915 = vmatmul.mubr.msk.bf16.gmra.mrb[12].mxu1 %vm329_vm0, %v305_v31 }
  0x38   : > { %931 = vmatpush3.bf16.msra.mxu1 %v1021_v33 }
  0x39   : > { %932 = vmatprep.subr.bf16.mxu1 %v1022_v34 }
  0x3c   : > { %933 = vmatpush3.bf16.msra.mxu1 %v1022_v34 }
  0xf2   : > { %v904_v36 = vpop.f32.mrb[0].mxu1 }
  0xf3   : > { %v397_v37 = vadd.f32 %v904_v36, %v1249_v35  ;;  %v388_v38 = vpop.f32.mrb[1].mxu1 }
  0xf4   : > { %v389_v39 = vadd.f32 %v1249_v35, %v388_v38  ;;  %v905_v40 = vpop.f32.mrb[2].mxu1 }
  0xf5   : > { %v453_v41 = vmul.f32 0.2, %v397_v37  ;;  %v400_v42 = vadd.f32 %v905_v40, %v1249_v35  ;;  %v391_v43 = vpop.f32.mrb[3].mxu1 }
  0xf6   : > { %v451_v44 = vmul.f32 0.2, %v389_v39  ;;  %v392_v45 = vadd.f32 %v1249_v35, %v391_v43 }
  0xf7   : > { %v454_v46 = vmul.f32 0.2, %v400_v42  ;;  %v469_v48 = vmax.f32 %v397_v37, %v453_v41 }
  0xf8   : > { %v452_v47 = vmul.f32 0.2, %v392_v45  ;;  %v467_v50 = vmax.f32 %v389_v39, %v451_v44 }
  0xf9   : > { %v470_v49 = vmax.f32 %v400_v42, %v454_v46  ;;  %v857_v46 = vld [vmem:[#allocation2] ss:$0 sm:$0xff] }
  0xfa   : > { %v468_v51 = vmax.f32 %v392_v45, %v452_v47  ;;  %v908_v52 = vpop.f32.mrb[4].mxu1  ;;  %v1091_v45 = vmov 0.0   ;;  %v1093_v47 = vmov 0  }
  0xfb   : > { %v484_v53 = vpack.c.bf16 %v470_v49, %v469_v48  ;;  %v413_v54 = vadd.f32 %v908_v52, %v1249_v35  ;;  %v404_v55 = vpop.f32.mrb[5].mxu1  ;;  %950 = vmatprep.subr.bf16.mxu0 %v1091_v45  ;;  %966 = vmatprep.mubr.msk.bf16.mxu0 %vm1092_vm1, %v1091_v45 }
  0xfc   : > { %v405_v56 = vadd.f32 %v1249_v35, %v404_v55  ;;  %v909_v57 = vpop.f32.mrb[6].mxu1  ;;  %v483_v58 = vpack.c.bf16 %v468_v51, %v467_v50  ;;  %1012 = vset.pattern.permute.xlu0 %v1093_v47 }
  0xfd   : > { %v457_v59 = vmul.f32 0.2, %v413_v54  ;;  %v416_v60 = vadd.f32 %v909_v57, %v1249_v35  ;;  %v407_v61 = vpop.f32.mrb[7].mxu1  ;;  %707 = vperm.xlu0 %1012, %v857_v46  }
  0xfe   : > { %v455_v62 = vmul.f32 0.2, %v405_v56  ;;  %v408_v63 = vadd.f32 %v1249_v35, %v407_v61  ;;  %934 = vmatprep.mubr.bf16.mxu1 %v483_v58 }
  0xff   : > { %v473_v0 = vmax.f32 %v413_v54, %v457_v59  ;;  %v458_v1 = vmul.f32 0.2, %v416_v60  ;;  %935 = vmatmul.mubr.bf16.vlgmr.msra.gmra.mrb[16].mxu1 %v484_v53 }
 0x100   : > { %v471_v2 = vmax.f32 %v405_v56, %v455_v62  ;;  %v456_v3 = vmul.f32 0.2, %v408_v63 }
 0x101   : > { %v474_v4 = vmax.f32 %v416_v60, %v458_v1 }
 0x102   : > { %v472_v5 = vmax.f32 %v408_v63, %v456_v3  ;;  %v912_v6 = vpop.f32.mrb[8].mxu1 }
 0x103   : > { %v429_v7 = vadd.f32 %v912_v6, %v1249_v35  ;;  %v486_v8 = vpack.c.bf16 %v474_v4, %v473_v0  ;;  %v420_v9 = vpop.f32.mrb[9].mxu1 }
 0x104   : > { %v485_v10 = vpack.c.bf16 %v472_v5, %v471_v2  ;;  %v421_v11 = vadd.f32 %v1249_v35, %v420_v9  ;;  %v913_v12 = vpop.f32.mrb[10].mxu1 }
 0x105   : > { %v461_v13 = vmul.f32 0.2, %v429_v7  ;;  %v432_v14 = vadd.f32 %v913_v12, %v1249_v35  ;;  %v423_v15 = vpop.f32.mrb[11].mxu1 }
 0x106   : > { %938 = vmatprep.mubr.bf16.mxu1 %v485_v10  ;;  %v459_v16 = vmul.f32 0.2, %v421_v11  ;;  %v424_v17 = vadd.f32 %v1249_v35, %v423_v15 }
 0x107   : > { %v477_v18 = vmax.f32 %v429_v7, %v461_v13  ;;  %939 = vmatmul.mubr.bf16.gmra.mrb[20].mxu1 %v486_v8  ;;  %v462_v19 = vmul.f32 0.2, %v432_v14 }
 0x108   : > { %v475_v20 = vmax.f32 %v421_v11, %v459_v16  ;;  %v460_v21 = vmul.f32 0.2, %v424_v17 }
 0x109   : > { %v478_v22 = vmax.f32 %v432_v14, %v462_v19 }
 0x10a   : > { %v476_v23 = vmax.f32 %v424_v17, %v460_v21  ;;  %v916_v24 = vpop.f32.mrb[12].mxu1 }
 0x10b   : > { %v488_v25 = vpack.c.bf16 %v478_v22, %v477_v18  ;;  %v445_v26 = vadd.f32 %v916_v24, %v1249_v35  ;;  %v436_v27 = vpop.f32.mrb[13].mxu1 }
 0x10c   : > { %v487_v28 = vpack.c.bf16 %v476_v23, %v475_v20  ;;  %v437_v29 = vadd.f32 %v1249_v35, %v436_v27  ;;  %v917_v30 = vpop.f32.mrb[14].mxu1 }
 0x10d   : > { %v465_v31 = vmul.f32 0.2, %v445_v26  ;;  %v448_v32 = vadd.f32 %v917_v30, %v1249_v35  ;;  %v439_v33 = vpop.f32.mrb[15].mxu1 }
 0x10e   : > { %942 = vmatprep.mubr.bf16.mxu1 %v487_v28  ;;  %v463_v34 = vmul.f32 0.2, %v437_v29  ;;  %v440_v36 = vadd.f32 %v1249_v35, %v439_v33  ;;  %v1272_v35 = vld [vmem:[%s1351_s4] ss:$0 sm:$0xff] }
 0x10f   : > { %943 = vmatmul.mubr.bf16.gmra.mrb[24].mxu1 %v488_v25  ;;  %v481_v37 = vmax.f32 %v445_v26, %v465_v31  ;;  %v466_v38 = vmul.f32 0.2, %v448_v32 }
 0x110   : > { %v479_v39 = vmax.f32 %v437_v29, %v463_v34  ;;  %v464_v40 = vmul.f32 0.2, %v440_v36 }
 0x111   : > { %v482_v41 = vmax.f32 %v448_v32, %v466_v38 }
 0x112   : > { %v480_v42 = vmax.f32 %v440_v36, %v464_v40 }
 0x113   : > { %v490_v43 = vpack.c.bf16 %v482_v41, %v481_v37 }
 0x114   : > { %v489_v44 = vpack.c.bf16 %v480_v42, %v479_v39 }
 0x116   : > { %946 = vmatprep.mubr.bf16.mxu1 %v489_v44 }
 0x117   : > { %947 = vmatmul.mubr.bf16.gmra.mrb[28].mxu1 %v490_v43 }
 0x1d2   : > { %v936_v48 = vpop.f32.mrb[16].mxu1 }
 0x1d3   : > { %v605_v49 = vadd.f32 %v936_v48, %v1272_v35  ;;  %v596_v50 = vpop.f32.mrb[17].mxu1 }
 0x1d4   : > { %v597_v51 = vadd.f32 %v1272_v35, %v596_v50  ;;  %v937_v52 = vpop.f32.mrb[18].mxu1 }
 0x1d5   : > { %v661_v53 = vmul.f32 0.2, %v605_v49  ;;  %v608_v54 = vadd.f32 %v937_v52, %v1272_v35  ;;  %v599_v55 = vpop.f32.mrb[19].mxu1 }
 0x1d6   : > { %v659_v56 = vmul.f32 0.2, %v597_v51  ;;  %v600_v57 = vadd.f32 %v1272_v35, %v599_v55 }
 0x1d7   : > { %v662_v58 = vmul.f32 0.2, %v608_v54  ;;  %v677_v60 = vmax.f32 %v605_v49, %v661_v53 }
 0x1d8   : > { %v660_v59 = vmul.f32 0.2, %v600_v57  ;;  %v675_v62 = vmax.f32 %v597_v51, %v659_v56 }
 0x1d9   : > { %v678_v61 = vmax.f32 %v608_v54, %v662_v58  ;;  %v708_v58 = vpop.permute.xlu0 %707 }
 0x1da   : > { %v676_v63 = vmax.f32 %v600_v57, %v660_v59  ;;  %v940_v0 = vpop.f32.mrb[20].mxu1 }
 0x1db   : > { %v621_v1 = vadd.f32 %v940_v0, %v1272_v35  ;;  %v612_v2 = vpop.f32.mrb[21].mxu1  ;;  %v692_v3 = vpack.c.bf16 %v678_v61, %v677_v60 }
 0x1dc   : > { %v613_v4 = vadd.f32 %v1272_v35, %v612_v2  ;;  %v941_v5 = vpop.f32.mrb[22].mxu1  ;;  %v691_v6 = vpack.c.bf16 %v676_v63, %v675_v62 }
 0x1dd   : > { %v665_v7 = vmul.f32 0.2, %v621_v1  ;;  %v624_v8 = vadd.f32 %v941_v5, %v1272_v35  ;;  %v615_v9 = vpop.f32.mrb[23].mxu1 }
 0x1de   : > { %v663_v10 = vmul.f32 0.2, %v613_v4  ;;  %v616_v11 = vadd.f32 %v1272_v35, %v615_v9  ;;  %951 = vmatpush3.bf16.xpose.msra.mxu0 %v691_v6 }
 0x1df   : > { %v666_v12 = vmul.f32 0.2, %v624_v8  ;;  %952 = vmatprep.subr.bf16.mxu0 %v1091_v45  ;;  %v681_v14 = vmax.f32 %v621_v1, %v665_v7 }
 0x1e0   : > { %v664_v13 = vmul.f32 0.2, %v616_v11  ;;  %v679_v16 = vmax.f32 %v613_v4, %v663_v10 }
 0x1e1   : > { %v682_v15 = vmax.f32 %v624_v8, %v666_v12 }
 0x1e2   : > { %v680_v17 = vmax.f32 %v616_v11, %v664_v13  ;;  %v944_v18 = vpop.f32.mrb[24].mxu1 }
 0x1e3   : > { %v637_v19 = vadd.f32 %v944_v18, %v1272_v35  ;;  %v628_v20 = vpop.f32.mrb[25].mxu1  ;;  %v694_v21 = vpack.c.bf16 %v682_v15, %v681_v14 }
 0x1e4   : > { %v629_v22 = vadd.f32 %v1272_v35, %v628_v20  ;;  %v945_v23 = vpop.f32.mrb[26].mxu1  ;;  %v693_v24 = vpack.c.bf16 %v680_v17, %v679_v16 }
 0x1e5   : > { %v669_v25 = vmul.f32 0.2, %v637_v19  ;;  %v640_v26 = vadd.f32 %v945_v23, %v1272_v35  ;;  %v631_v27 = vpop.f32.mrb[27].mxu1 }
 0x1e6   : > { %953 = vmatpush3.bf16.xpose.msra.mxu0 %v692_v3  ;;  %v667_v28 = vmul.f32 0.2, %v629_v22  ;;  %v632_v29 = vadd.f32 %v1272_v35, %v631_v27 }
 0x1e7   : > { %v685_v30 = vmax.f32 %v637_v19, %v669_v25  ;;  %v670_v31 = vmul.f32 0.2, %v640_v26  ;;  %954 = vmatprep.subr.bf16.mxu0 %v1091_v45 }
 0x1e8   : > { %v683_v32 = vmax.f32 %v629_v22, %v667_v28  ;;  %v668_v33 = vmul.f32 0.2, %v632_v29 }
 0x1e9   : > { %v686_v34 = vmax.f32 %v640_v26, %v670_v31 }
 0x1ea   : > { %v684_v36 = vmax.f32 %v632_v29, %v668_v33  ;;  %v948_v37 = vpop.f32.mrb[28].mxu1 }
 0x1eb   : > { %v653_v38 = vadd.f32 %v948_v37, %v1272_v35  ;;  %v644_v39 = vpop.f32.mrb[29].mxu1  ;;  %v696_v40 = vpack.c.bf16 %v686_v34, %v685_v30 }
 0x1ec   : > { %v645_v41 = vadd.f32 %v1272_v35, %v644_v39  ;;  %v949_v42 = vpop.f32.mrb[30].mxu1  ;;  %v695_v43 = vpack.c.bf16 %v684_v36, %v683_v32 }
 0x1ed   : > { %v673_v44 = vmul.f32 0.2, %v653_v38  ;;  %v656_v46 = vadd.f32 %v949_v42, %v1272_v35  ;;  %v647_v47 = vpop.f32.mrb[31].mxu1 }
 0x1ee   : > { %955 = vmatpush3.bf16.xpose.msra.mxu0 %v693_v24  ;;  %v671_v48 = vmul.f32 0.2, %v645_v41  ;;  %v648_v49 = vadd.f32 %v1272_v35, %v647_v47  ;;  %v699_v35 = vld [vmem:[%s1352_s5] sm:$0xf] }
 0x1ef   : > { %956 = vmatprep.subr.bf16.mxu0 %v1091_v45  ;;  %v689_v50 = vmax.f32 %v653_v38, %v673_v44  ;;  %v674_v51 = vmul.f32 0.2, %v656_v46 }
 0x1f0   : > { %v687_v52 = vmax.f32 %v645_v41, %v671_v48  ;;  %v672_v53 = vmul.f32 0.2, %v648_v49 }
 0x1f1   : > { %v690_v54 = vmax.f32 %v656_v46, %v674_v51 }
 0x1f2   : > { %v688_v55 = vmax.f32 %v648_v49, %v672_v53 }
 0x1f3   : > { %v698_v56 = vpack.c.bf16 %v690_v54, %v689_v50 }
 0x1f4   : > { %v697_v57 = vpack.c.bf16 %v688_v55, %v687_v52 }
 0x1f6   : > { %957 = vmatpush3.bf16.xpose.msra.mxu0 %v694_v21 }
 0x1f7   : > { %958 = vmatprep.subr.bf16.mxu0 %v1091_v45 }
 0x1fe   : > { %959 = vmatpush3.bf16.xpose.msra.mxu0 %v695_v43 }
 0x1ff   : > { %960 = vmatprep.subr.bf16.mxu0 %v1091_v45 }
 0x206   : > { %961 = vmatpush3.bf16.xpose.msra.mxu0 %v696_v40 }
 0x207   : > { %962 = vmatprep.subr.bf16.mxu0 %v1091_v45 }
 0x20e   : > { %963 = vmatpush3.bf16.xpose.msra.mxu0 %v697_v57 }
 0x20f   : > { %964 = vmatprep.subr.bf16.mxu0 %v1091_v45 }
 0x216   : > { %965 = vmatpush3.bf16.xpose.msra.mxu0 %v698_v56 }
 0x21d   : > { %967 = vmatmul.mubr.bf16.vlgmr.msra.gmra.mrb[0].mxu0 %v699_v35 }
 0x2f0   : > { %v744_v59 = vpop.f32.mrb[0].mxu0 }
 0x2f1   : > { %v745_v60 = vadd.f32 %v744_v59, %v708_v58  ;;  %v968_v61 = vpop.f32.mrb[1].mxu0 }
 0x2f2   : > { %v747_v62 = vpop.f32.mrb[2].mxu0 }
 0x2f3   : > { %v858_v63 = vmul.f32 -1.442695, %v745_v60  ;;  %v969_v0 = vpop.f32.mrb[3].mxu0 }
 0x2f5   : > { %1023 = vpow2.f32 %v858_v63 }
 0x2ff   : > { %v1024_v1 = vpop.eup %1023 }
 0x300   : > { %v753_v2 = vadd.f32 1.0, %v1024_v1 }
 0x302   : > { %1025 = vrcp.f32 %v753_v2 }
 0x30c   : > { %v1026_v45 = vpop.eup %1025 }
 0x30d   : > { %756 = vst [vmem:[%s274_s18] sm:$0xff] %v1026_v45 }
 0x30e   : > { %1040 = shalt.err (!%p1037_p3)
}
 0x30f   : > { %s1041_s9 = scalar_lea.hbm %s1305_s22, 128  ;;  %s1045_s15 = scalar_lea.hbm %s1354_s7, 256 }
 0x310   : > { %p1042_p4 = scmp.ne.s32.totalorder %s1305_s22, %s1041_s9  ;;  %p1046_p9 = scmp.lt.u32.totalorder %s1305_s22, %s1354_s7 }
 0x311   : > { %p1047_p10 = scmp.lt.u32.totalorder %s1045_s15, %s1041_s9  ;;  %p1049_p12 = scmp.lt.u32.totalorder %s1041_s9, %s1305_s22 }
 0x312   : > { %p1043_p7 = pnand %p1042_p4, %p1176_p5 }
 0x313   : > { %p1048_p11 = por %p1047_p10, %p1046_p9 }
 0x314   : > { %p1044_p8 = pneg %p1043_p7 }
 0x315   : > { %p1050_p13 = por %p1049_p12, %p1048_p11 }
 0x317   : > { %p1051_p0 = pnand %p1050_p13, %p1044_p8 }
 0x319   : > { %1054 = shalt.err (!%p1051_p0)
}
 0x31a   : > { %970 = dma.vmem_to_hbm [thread:$0]  (%p1176_p5), %s1307_s19, 128, %s1305_s22, %s758_s23  }
 0x31b PF: > { %p976_p1 = scmp.ge.s32.totalorder %s1089_s29, 2  ;;  %s783_s18 = sand.u32 1, %s1077_s26  }
 0x31c   : > { %s784_s20 = scalar_lea.sflag [#allocation4], %s783_s18 }
 0x31d   : > { %p973_p2 = pnand %p976_p1, %p1180_p6 }
 0x31f   : > { %1072 = dma.done.wait (!%p973_p2), %s784_s20, 128  }
 0x320   : > { %1074 = vsyncadd (!%p973_p2), %s784_s20, 4294967168  ;;  %p19_p3 = scmp.ge.s32.totalorder %s1163_s8, 4   ;;  %s1357_s26 = smov %s1081_s27 }
 0x321   : > { %s1358_s27 = smov %s1085_s28  ;;  %s1359_s28 = smov %s1174_s11 }
 0x322   : > { %s1360_s29 = smov %s1163_s8  ;;  %21 = sbr.rel (!%p19_p3) target bundleno = 6 (0x6), region = 83 }
 0x329   :  { %789 = vsyncpa [#allocation4], 1 }
 0x32a   :  { %791 = vsyncpa [#allocation4 + $0x1], 1 }

</bundles_post_ra>
